<compile_context>
chip_gen: v7x
topology: tpu7x:2x2x1
jax: 0.10.0
libtpu: 0.0.40
codegen_flags: <defaults>
</compile_context>

<pallas_src>
import jax
import jax.numpy as jnp
import numpy as np
from jax.experimental import pallas as pl
from jax.experimental.pallas import tpu as pltpu


def t2t_kernel(x_ref,      # (SEQ, BATCH, H)  pre-embedded inputs, f32
               wg_ref,     # (2H, 4H)         packed [W_ih.T ; W_hh.T], gates i|f|g|o
               bg_ref,     # (1, 4H)          b_ih + b_hh
               wo_ref,     # (H, OUT)         linear weight, transposed
               bo_ref,     # (1, OUT)         linear bias
               out_ref):   # (SEQ, BATCH, OUT)
    seq, batch, hidden = x_ref.shape

    # Load the small weights once; they stay in vregs across the time loop.
    w_gates = wg_ref[...]
    b_gates = bg_ref[...]
    w_out = wo_ref[...]
    b_out = bo_ref[...]

    def step(t, carry):
        h, c = carry
        # Single packed gate matmul: (B, 2H) x (2H, 4H) -> (B, 4H); 4H == 128
        # gives exactly one MXU lane tile per step.
        xh = jnp.concatenate([x_ref[t], h], axis=-1)                  # (B, 2H)
        g = jnp.dot(xh, w_gates,
                    preferred_element_type=jnp.float32) + b_gates     # (B, 4H)
        i_g = jax.nn.sigmoid(g[:, 0 * hidden:1 * hidden])
        f_g = jax.nn.sigmoid(g[:, 1 * hidden:2 * hidden])
        g_g = jnp.tanh(g[:, 2 * hidden:3 * hidden])
        o_g = jax.nn.sigmoid(g[:, 3 * hidden:4 * hidden])
        c = f_g * c + i_g * g_g
        h = o_g * jnp.tanh(c)
        # Per-step store goes to the VMEM-resident output block; the HBM
        # writeback is one DMA at kernel end.
        out_ref[t] = (jnp.dot(h, w_out, preferred_element_type=jnp.float32)
                      + b_out).astype(out_ref.dtype)
        return (h, c)

    h0 = jnp.zeros((batch, hidden), jnp.float32)
    c0 = jnp.zeros((batch, hidden), jnp.float32)
    # SEQ is small and static here; full unroll gives the scheduler static
    # indices. For long sequences switch to unroll=False.
    jax.lax.fori_loop(0, seq, step, (h0, c0), unroll=True)


@jax.jit
def text_to_text_forward(tokens, params):
    """tokens: (SEQ, BATCH) int32. params in PyTorch layout (see __main__)."""
    emb, w_ih, w_hh, b_ih, b_hh, w_lin, b_lin = params
    seq, batch = tokens.shape
    hidden = emb.shape[1]
    out_dim = w_lin.shape[0]

    # Hoist the (non-recurrent) embedding gather out of the kernel.
    x = jnp.take(emb, tokens, axis=0).astype(jnp.float32)     # (SEQ, BATCH, H)

    # Pack the gate weights: PyTorch stacks rows [i; f; g; o] along dim 0 of a
    # (4H, H) matrix, so the transposes give column blocks i | f | g | o.
    w_gates = jnp.concatenate([w_ih.T, w_hh.T], axis=0)       # (2H, 4H)
    b_gates = (b_ih + b_hh).reshape(1, 4 * hidden)            # (1, 4H)
    w_out = w_lin.T                                           # (H, OUT)
    b_out = b_lin.reshape(1, out_dim)                         # (1, OUT)

    vmem = pl.BlockSpec(memory_space=pltpu.MemorySpace.VMEM)
    return pl.pallas_call(
        t2t_kernel,
        out_shape=jax.ShapeDtypeStruct((seq, batch, out_dim), jnp.float32),
        in_specs=[vmem, vmem, vmem, vmem, vmem],
        out_specs=vmem,
    )(x, w_gates, b_gates, w_out, b_out)


def reference_forward(tokens, params):
    """Pure-JAX reference matching PyTorch Embedding -> LSTM -> Linear."""
    emb, w_ih, w_hh, b_ih, b_hh, w_lin, b_lin = params
    hidden = emb.shape[1]
    batch = tokens.shape[1]
    x = emb[tokens]                                           # (S, B, H)

    def step(carry, x_t):
        h, c = carry
        z = x_t @ w_ih.T + h @ w_hh.T + b_ih + b_hh           # (B, 4H)
        i = jax.nn.sigmoid(z[:, 0 * hidden:1 * hidden])
        f = jax.nn.sigmoid(z[:, 1 * hidden:2 * hidden])
        g = jnp.tanh(z[:, 2 * hidden:3 * hidden])
        o = jax.nn.sigmoid(z[:, 3 * hidden:4 * hidden])
        c = f * c + i * g
        h = o * jnp.tanh(c)
        return (h, c), h

    h0 = jnp.zeros((batch, hidden), jnp.float32)
    c0 = jnp.zeros((batch, hidden), jnp.float32)
    _, hs = jax.lax.scan(step, (h0, c0), x)
    return hs @ w_lin.T + b_lin                               # (S, B, OUT)


if __name__ == "__main__":
    VOCAB, HIDDEN, OUT = 64, 32, 16     # input_size, hidden_size, output_size
    SEQ, BATCH = 8, 2

    key = jax.random.PRNGKey(0)
    keys = jax.random.split(key, 8)
    scale = 0.1
    # PyTorch-layout parameters.
    emb = scale * jax.random.normal(keys[0], (VOCAB, HIDDEN), jnp.float32)
    w_ih = scale * jax.random.normal(keys[1], (4 * HIDDEN, HIDDEN), jnp.float32)
    w_hh = scale * jax.random.normal(keys[2], (4 * HIDDEN, HIDDEN), jnp.float32)
    b_ih = scale * jax.random.normal(keys[3], (4 * HIDDEN,), jnp.float32)
    b_hh = scale * jax.random.normal(keys[4], (4 * HIDDEN,), jnp.float32)
    w_lin = scale * jax.random.normal(keys[5], (OUT, HIDDEN), jnp.float32)
    b_lin = scale * jax.random.normal(keys[6], (OUT,), jnp.float32)
    tokens = jax.random.randint(keys[7], (SEQ, BATCH), 0, VOCAB, dtype=jnp.int32)

    params = (emb, w_ih, w_hh, b_ih, b_hh, w_lin, b_lin)

    out = jax.block_until_ready(text_to_text_forward(tokens, params))
    ref = jax.block_until_ready(reference_forward(tokens, params))
    np.testing.assert_allclose(np.asarray(out), np.asarray(ref),
                               rtol=2e-2, atol=2e-2)

    print("KERNEL_OK")
</pallas_src>

<mosaic_0001>
module attributes {stable_mosaic.version = 11 : i64} {
  func.func @t2t_kernel(%arg0: memref<8x2x32xf32, #tpu.memory_space<vmem>>, %arg1: memref<64x128xf32, #tpu.memory_space<vmem>>, %arg2: memref<1x128xf32, #tpu.memory_space<vmem>>, %arg3: memref<32x16xf32, #tpu.memory_space<vmem>>, %arg4: memref<1x16xf32, #tpu.memory_space<vmem>>, %arg5: memref<8x2x16xf32, #tpu.memory_space<vmem>>) attributes {dimension_semantics = [], scalar_prefetch = 0 : i64, scratch_operands = 0 : i64, tpu.core_type = #tpu.core_type<tc>} {
    %c0 = arith.constant 0 : index
    %c0_0 = arith.constant 0 : index
    %0 = vector.load %arg1[%c0, %c0_0] : memref<64x128xf32, #tpu.memory_space<vmem>>, vector<64x128xf32>
    %c0_1 = arith.constant 0 : index
    %c0_2 = arith.constant 0 : index
    %1 = vector.load %arg2[%c0_1, %c0_2] : memref<1x128xf32, #tpu.memory_space<vmem>>, vector<1x128xf32>
    %c0_3 = arith.constant 0 : index
    %c0_4 = arith.constant 0 : index
    %2 = vector.load %arg3[%c0_3, %c0_4] : memref<32x16xf32, #tpu.memory_space<vmem>>, vector<32x16xf32>
    %c0_5 = arith.constant 0 : index
    %c0_6 = arith.constant 0 : index
    %3 = vector.load %arg4[%c0_5, %c0_6] : memref<1x16xf32, #tpu.memory_space<vmem>>, vector<1x16xf32>
    %cst = arith.constant 0.000000e+00 : f32
    %4 = vector.broadcast %cst : f32 to vector<2x32xf32>
    %cst_7 = arith.constant 0.000000e+00 : f32
    %5 = vector.broadcast %cst_7 : f32 to vector<2x32xf32>
    %c0_i32 = arith.constant 0 : i32
    %6 = arith.index_cast %c0_i32 : i32 to index
    %c0_8 = arith.constant 0 : index
    %c0_9 = arith.constant 0 : index
    %7 = vector.load %arg0[%6, %c0_8, %c0_9] : memref<8x2x32xf32, #tpu.memory_space<vmem>>, vector<1x2x32xf32>
    %8 = vector.shape_cast %7 : vector<1x2x32xf32> to vector<2x32xf32>
    %9 = tpu.concatenate %8, %4 in 1 : vector<2x32xf32>, vector<2x32xf32> -> vector<2x64xf32>
    %cst_10 = arith.constant dense<0.000000e+00> : vector<2x128xf32>
    %10 = tpu.matmul %9, %0, %cst_10 {dimension_numbers = #tpu.dot_dimension_numbers<[1], [0], [0], [1], [0, 0, 1, 1], [], []>} : vector<2x64xf32>, vector<64x128xf32>, vector<2x128xf32> -> vector<2x128xf32>
    %11 = vector.broadcast %1 : vector<1x128xf32> to vector<2x128xf32>
    %12 = arith.addf %10, %11 : vector<2x128xf32>
    %13 = vector.extract_strided_slice %12 {offsets = [0, 0], sizes = [2, 32], strides = [1, 1]} : vector<2x128xf32> to vector<2x32xf32>
    %14 = arith.negf %13 : vector<2x32xf32>
    %15 = math.exp %14 : vector<2x32xf32>
    %cst_11 = arith.constant 1.000000e+00 : f32
    %16 = vector.broadcast %cst_11 : f32 to vector<2x32xf32>
    %17 = arith.addf %16, %15 : vector<2x32xf32>
    %18 = arith.divf %16, %17 : vector<2x32xf32>
    %19 = vector.extract_strided_slice %12 {offsets = [0, 32], sizes = [2, 32], strides = [1, 1]} : vector<2x128xf32> to vector<2x32xf32>
    %20 = arith.negf %19 : vector<2x32xf32>
    %21 = math.exp %20 : vector<2x32xf32>
    %cst_12 = arith.constant 1.000000e+00 : f32
    %22 = vector.broadcast %cst_12 : f32 to vector<2x32xf32>
    %23 = arith.addf %22, %21 : vector<2x32xf32>
    %24 = arith.divf %22, %23 : vector<2x32xf32>
    %25 = vector.extract_strided_slice %12 {offsets = [0, 64], sizes = [2, 32], strides = [1, 1]} : vector<2x128xf32> to vector<2x32xf32>
    %26 = math.tanh %25 : vector<2x32xf32>
    %27 = vector.extract_strided_slice %12 {offsets = [0, 96], sizes = [2, 32], strides = [1, 1]} : vector<2x128xf32> to vector<2x32xf32>
    %28 = arith.negf %27 : vector<2x32xf32>
    %29 = math.exp %28 : vector<2x32xf32>
    %cst_13 = arith.constant 1.000000e+00 : f32
    %30 = vector.broadcast %cst_13 : f32 to vector<2x32xf32>
    %31 = arith.addf %30, %29 : vector<2x32xf32>
    %32 = arith.divf %30, %31 : vector<2x32xf32>
    %33 = arith.mulf %24, %5 : vector<2x32xf32>
    %34 = arith.mulf %18, %26 : vector<2x32xf32>
    %35 = arith.addf %33, %34 : vector<2x32xf32>
    %36 = math.tanh %35 : vector<2x32xf32>
    %37 = arith.mulf %32, %36 : vector<2x32xf32>
    %cst_14 = arith.constant dense<0.000000e+00> : vector<2x16xf32>
    %38 = tpu.matmul %37, %2, %cst_14 {dimension_numbers = #tpu.dot_dimension_numbers<[1], [0], [0], [1], [0, 0, 1, 1], [], []>} : vector<2x32xf32>, vector<32x16xf32>, vector<2x16xf32> -> vector<2x16xf32>
    %39 = vector.broadcast %3 : vector<1x16xf32> to vector<2x16xf32>
    %40 = arith.addf %38, %39 : vector<2x16xf32>
    %41 = arith.index_cast %c0_i32 : i32 to index
    %c0_15 = arith.constant 0 : index
    %c0_16 = arith.constant 0 : index
    %42 = vector.load %arg5[%41, %c0_15, %c0_16] : memref<8x2x16xf32, #tpu.memory_space<vmem>>, vector<1x2x16xf32>
    %43 = vector.shape_cast %42 : vector<1x2x16xf32> to vector<2x16xf32>
    %44 = vector.shape_cast %40 : vector<2x16xf32> to vector<1x2x16xf32>
    tpu.vector_store %arg5[%41, %c0_15, %c0_16], %44 {strides = array<i32>} : memref<8x2x16xf32, #tpu.memory_space<vmem>>, vector<1x2x16xf32>,
    %c1_i32 = arith.constant 1 : i32
    %45 = arith.index_cast %c1_i32 : i32 to index
    %c0_17 = arith.constant 0 : index
    %c0_18 = arith.constant 0 : index
    %46 = vector.load %arg0[%45, %c0_17, %c0_18] : memref<8x2x32xf32, #tpu.memory_space<vmem>>, vector<1x2x32xf32>
    %47 = vector.shape_cast %46 : vector<1x2x32xf32> to vector<2x32xf32>
    %48 = tpu.concatenate %47, %37 in 1 : vector<2x32xf32>, vector<2x32xf32> -> vector<2x64xf32>
    %cst_19 = arith.constant dense<0.000000e+00> : vector<2x128xf32>
    %49 = tpu.matmul %48, %0, %cst_19 {dimension_numbers = #tpu.dot_dimension_numbers<[1], [0], [0], [1], [0, 0, 1, 1], [], []>} : vector<2x64xf32>, vector<64x128xf32>, vector<2x128xf32> -> vector<2x128xf32>
    %50 = vector.broadcast %1 : vector<1x128xf32> to vector<2x128xf32>
    %51 = arith.addf %49, %50 : vector<2x128xf32>
    %52 = vector.extract_strided_slice %51 {offsets = [0, 0], sizes = [2, 32], strides = [1, 1]} : vector<2x128xf32> to vector<2x32xf32>
    %53 = arith.negf %52 : vector<2x32xf32>
    %54 = math.exp %53 : vector<2x32xf32>
    %cst_20 = arith.constant 1.000000e+00 : f32
    %55 = vector.broadcast %cst_20 : f32 to vector<2x32xf32>
    %56 = arith.addf %55, %54 : vector<2x32xf32>
    %57 = arith.divf %55, %56 : vector<2x32xf32>
    %58 = vector.extract_strided_slice %51 {offsets = [0, 32], sizes = [2, 32], strides = [1, 1]} : vector<2x128xf32> to vector<2x32xf32>
    %59 = arith.negf %58 : vector<2x32xf32>
    %60 = math.exp %59 : vector<2x32xf32>
    %cst_21 = arith.constant 1.000000e+00 : f32
    %61 = vector.broadcast %cst_21 : f32 to vector<2x32xf32>
    %62 = arith.addf %61, %60 : vector<2x32xf32>
    %63 = arith.divf %61, %62 : vector<2x32xf32>
    %64 = vector.extract_strided_slice %51 {offsets = [0, 64], sizes = [2, 32], strides = [1, 1]} : vector<2x128xf32> to vector<2x32xf32>
    %65 = math.tanh %64 : vector<2x32xf32>
    %66 = vector.extract_strided_slice %51 {offsets = [0, 96], sizes = [2, 32], strides = [1, 1]} : vector<2x128xf32> to vector<2x32xf32>
    %67 = arith.negf %66 : vector<2x32xf32>
    %68 = math.exp %67 : vector<2x32xf32>
    %cst_22 = arith.constant 1.000000e+00 : f32
    %69 = vector.broadcast %cst_22 : f32 to vector<2x32xf32>
    %70 = arith.addf %69, %68 : vector<2x32xf32>
    %71 = arith.divf %69, %70 : vector<2x32xf32>
    %72 = arith.mulf %63, %35 : vector<2x32xf32>
    %73 = arith.mulf %57, %65 : vector<2x32xf32>
    %74 = arith.addf %72, %73 : vector<2x32xf32>
    %75 = math.tanh %74 : vector<2x32xf32>
    %76 = arith.mulf %71, %75 : vector<2x32xf32>
    %cst_23 = arith.constant dense<0.000000e+00> : vector<2x16xf32>
    %77 = tpu.matmul %76, %2, %cst_23 {dimension_numbers = #tpu.dot_dimension_numbers<[1], [0], [0], [1], [0, 0, 1, 1], [], []>} : vector<2x32xf32>, vector<32x16xf32>, vector<2x16xf32> -> vector<2x16xf32>
    %78 = vector.broadcast %3 : vector<1x16xf32> to vector<2x16xf32>
    %79 = arith.addf %77, %78 : vector<2x16xf32>
    %80 = arith.index_cast %c1_i32 : i32 to index
    %c0_24 = arith.constant 0 : index
    %c0_25 = arith.constant 0 : index
    %81 = vector.load %arg5[%80, %c0_24, %c0_25] : memref<8x2x16xf32, #tpu.memory_space<vmem>>, vector<1x2x16xf32>
    %82 = vector.shape_cast %81 : vector<1x2x16xf32> to vector<2x16xf32>
    %83 = vector.shape_cast %79 : vector<2x16xf32> to vector<1x2x16xf32>
    tpu.vector_store %arg5[%80, %c0_24, %c0_25], %83 {strides = array<i32>} : memref<8x2x16xf32, #tpu.memory_space<vmem>>, vector<1x2x16xf32>,
    %c2_i32 = arith.constant 2 : i32
    %84 = arith.index_cast %c2_i32 : i32 to index
    %c0_26 = arith.constant 0 : index
    %c0_27 = arith.constant 0 : index
    %85 = vector.load %arg0[%84, %c0_26, %c0_27] : memref<8x2x32xf32, #tpu.memory_space<vmem>>, vector<1x2x32xf32>
    %86 = vector.shape_cast %85 : vector<1x2x32xf32> to vector<2x32xf32>
    %87 = tpu.concatenate %86, %76 in 1 : vector<2x32xf32>, vector<2x32xf32> -> vector<2x64xf32>
    %cst_28 = arith.constant dense<0.000000e+00> : vector<2x128xf32>
    %88 = tpu.matmul %87, %0, %cst_28 {dimension_numbers = #tpu.dot_dimension_numbers<[1], [0], [0], [1], [0, 0, 1, 1], [], []>} : vector<2x64xf32>, vector<64x128xf32>, vector<2x128xf32> -> vector<2x128xf32>
    %89 = vector.broadcast %1 : vector<1x128xf32> to vector<2x128xf32>
    %90 = arith.addf %88, %89 : vector<2x128xf32>
    %91 = vector.extract_strided_slice %90 {offsets = [0, 0], sizes = [2, 32], strides = [1, 1]} : vector<2x128xf32> to vector<2x32xf32>
    %92 = arith.negf %91 : vector<2x32xf32>
    %93 = math.exp %92 : vector<2x32xf32>
    %cst_29 = arith.constant 1.000000e+00 : f32
    %94 = vector.broadcast %cst_29 : f32 to vector<2x32xf32>
    %95 = arith.addf %94, %93 : vector<2x32xf32>
    %96 = arith.divf %94, %95 : vector<2x32xf32>
    %97 = vector.extract_strided_slice %90 {offsets = [0, 32], sizes = [2, 32], strides = [1, 1]} : vector<2x128xf32> to vector<2x32xf32>
    %98 = arith.negf %97 : vector<2x32xf32>
    %99 = math.exp %98 : vector<2x32xf32>
    %cst_30 = arith.constant 1.000000e+00 : f32
    %100 = vector.broadcast %cst_30 : f32 to vector<2x32xf32>
    %101 = arith.addf %100, %99 : vector<2x32xf32>
    %102 = arith.divf %100, %101 : vector<2x32xf32>
    %103 = vector.extract_strided_slice %90 {offsets = [0, 64], sizes = [2, 32], strides = [1, 1]} : vector<2x128xf32> to vector<2x32xf32>
    %104 = math.tanh %103 : vector<2x32xf32>
    %105 = vector.extract_strided_slice %90 {offsets = [0, 96], sizes = [2, 32], strides = [1, 1]} : vector<2x128xf32> to vector<2x32xf32>
    %106 = arith.negf %105 : vector<2x32xf32>
    %107 = math.exp %106 : vector<2x32xf32>
    %cst_31 = arith.constant 1.000000e+00 : f32
    %108 = vector.broadcast %cst_31 : f32 to vector<2x32xf32>
    %109 = arith.addf %108, %107 : vector<2x32xf32>
    %110 = arith.divf %108, %109 : vector<2x32xf32>
    %111 = arith.mulf %102, %74 : vector<2x32xf32>
    %112 = arith.mulf %96, %104 : vector<2x32xf32>
    %113 = arith.addf %111, %112 : vector<2x32xf32>
    %114 = math.tanh %113 : vector<2x32xf32>
    %115 = arith.mulf %110, %114 : vector<2x32xf32>
    %cst_32 = arith.constant dense<0.000000e+00> : vector<2x16xf32>
    %116 = tpu.matmul %115, %2, %cst_32 {dimension_numbers = #tpu.dot_dimension_numbers<[1], [0], [0], [1], [0, 0, 1, 1], [], []>} : vector<2x32xf32>, vector<32x16xf32>, vector<2x16xf32> -> vector<2x16xf32>
    %117 = vector.broadcast %3 : vector<1x16xf32> to vector<2x16xf32>
    %118 = arith.addf %116, %117 : vector<2x16xf32>
    %119 = arith.index_cast %c2_i32 : i32 to index
    %c0_33 = arith.constant 0 : index
    %c0_34 = arith.constant 0 : index
    %120 = vector.load %arg5[%119, %c0_33, %c0_34] : memref<8x2x16xf32, #tpu.memory_space<vmem>>, vector<1x2x16xf32>
    %121 = vector.shape_cast %120 : vector<1x2x16xf32> to vector<2x16xf32>
    %122 = vector.shape_cast %118 : vector<2x16xf32> to vector<1x2x16xf32>
    tpu.vector_store %arg5[%119, %c0_33, %c0_34], %122 {strides = array<i32>} : memref<8x2x16xf32, #tpu.memory_space<vmem>>, vector<1x2x16xf32>,
    %c3_i32 = arith.constant 3 : i32
    %123 = arith.index_cast %c3_i32 : i32 to index
    %c0_35 = arith.constant 0 : index
    %c0_36 = arith.constant 0 : index
    %124 = vector.load %arg0[%123, %c0_35, %c0_36] : memref<8x2x32xf32, #tpu.memory_space<vmem>>, vector<1x2x32xf32>
    %125 = vector.shape_cast %124 : vector<1x2x32xf32> to vector<2x32xf32>
    %126 = tpu.concatenate %125, %115 in 1 : vector<2x32xf32>, vector<2x32xf32> -> vector<2x64xf32>
    %cst_37 = arith.constant dense<0.000000e+00> : vector<2x128xf32>
    %127 = tpu.matmul %126, %0, %cst_37 {dimension_numbers = #tpu.dot_dimension_numbers<[1], [0], [0], [1], [0, 0, 1, 1], [], []>} : vector<2x64xf32>, vector<64x128xf32>, vector<2x128xf32> -> vector<2x128xf32>
    %128 = vector.broadcast %1 : vector<1x128xf32> to vector<2x128xf32>
    %129 = arith.addf %127, %128 : vector<2x128xf32>
    %130 = vector.extract_strided_slice %129 {offsets = [0, 0], sizes = [2, 32], strides = [1, 1]} : vector<2x128xf32> to vector<2x32xf32>
    %131 = arith.negf %130 : vector<2x32xf32>
    %132 = math.exp %131 : vector<2x32xf32>
    %cst_38 = arith.constant 1.000000e+00 : f32
    %133 = vector.broadcast %cst_38 : f32 to vector<2x32xf32>
    %134 = arith.addf %133, %132 : vector<2x32xf32>
    %135 = arith.divf %133, %134 : vector<2x32xf32>
    %136 = vector.extract_strided_slice %129 {offsets = [0, 32], sizes = [2, 32], strides = [1, 1]} : vector<2x128xf32> to vector<2x32xf32>
    %137 = arith.negf %136 : vector<2x32xf32>
    %138 = math.exp %137 : vector<2x32xf32>
    %cst_39 = arith.constant 1.000000e+00 : f32
    %139 = vector.broadcast %cst_39 : f32 to vector<2x32xf32>
    %140 = arith.addf %139, %138 : vector<2x32xf32>
    %141 = arith.divf %139, %140 : vector<2x32xf32>
    %142 = vector.extract_strided_slice %129 {offsets = [0, 64], sizes = [2, 32], strides = [1, 1]} : vector<2x128xf32> to vector<2x32xf32>
    %143 = math.tanh %142 : vector<2x32xf32>
    %144 = vector.extract_strided_slice %129 {offsets = [0, 96], sizes = [2, 32], strides = [1, 1]} : vector<2x128xf32> to vector<2x32xf32>
    %145 = arith.negf %144 : vector<2x32xf32>
    %146 = math.exp %145 : vector<2x32xf32>
    %cst_40 = arith.constant 1.000000e+00 : f32
    %147 = vector.broadcast %cst_40 : f32 to vector<2x32xf32>
    %148 = arith.addf %147, %146 : vector<2x32xf32>
    %149 = arith.divf %147, %148 : vector<2x32xf32>
    %150 = arith.mulf %141, %113 : vector<2x32xf32>
    %151 = arith.mulf %135, %143 : vector<2x32xf32>
    %152 = arith.addf %150, %151 : vector<2x32xf32>
    %153 = math.tanh %152 : vector<2x32xf32>
    %154 = arith.mulf %149, %153 : vector<2x32xf32>
    %cst_41 = arith.constant dense<0.000000e+00> : vector<2x16xf32>
    %155 = tpu.matmul %154, %2, %cst_41 {dimension_numbers = #tpu.dot_dimension_numbers<[1], [0], [0], [1], [0, 0, 1, 1], [], []>} : vector<2x32xf32>, vector<32x16xf32>, vector<2x16xf32> -> vector<2x16xf32>
    %156 = vector.broadcast %3 : vector<1x16xf32> to vector<2x16xf32>
    %157 = arith.addf %155, %156 : vector<2x16xf32>
    %158 = arith.index_cast %c3_i32 : i32 to index
    %c0_42 = arith.constant 0 : index
    %c0_43 = arith.constant 0 : index
    %159 = vector.load %arg5[%158, %c0_42, %c0_43] : memref<8x2x16xf32, #tpu.memory_space<vmem>>, vector<1x2x16xf32>
    %160 = vector.shape_cast %159 : vector<1x2x16xf32> to vector<2x16xf32>
    %161 = vector.shape_cast %157 : vector<2x16xf32> to vector<1x2x16xf32>
    tpu.vector_store %arg5[%158, %c0_42, %c0_43], %161 {strides = array<i32>} : memref<8x2x16xf32, #tpu.memory_space<vmem>>, vector<1x2x16xf32>,
    %c4_i32 = arith.constant 4 : i32
    %162 = arith.index_cast %c4_i32 : i32 to index
    %c0_44 = arith.constant 0 : index
    %c0_45 = arith.constant 0 : index
    %163 = vector.load %arg0[%162, %c0_44, %c0_45] : memref<8x2x32xf32, #tpu.memory_space<vmem>>, vector<1x2x32xf32>
    %164 = vector.shape_cast %163 : vector<1x2x32xf32> to vector<2x32xf32>
    %165 = tpu.concatenate %164, %154 in 1 : vector<2x32xf32>, vector<2x32xf32> -> vector<2x64xf32>
    %cst_46 = arith.constant dense<0.000000e+00> : vector<2x128xf32>
    %166 = tpu.matmul %165, %0, %cst_46 {dimension_numbers = #tpu.dot_dimension_numbers<[1], [0], [0], [1], [0, 0, 1, 1], [], []>} : vector<2x64xf32>, vector<64x128xf32>, vector<2x128xf32> -> vector<2x128xf32>
    %167 = vector.broadcast %1 : vector<1x128xf32> to vector<2x128xf32>
    %168 = arith.addf %166, %167 : vector<2x128xf32>
    %169 = vector.extract_strided_slice %168 {offsets = [0, 0], sizes = [2, 32], strides = [1, 1]} : vector<2x128xf32> to vector<2x32xf32>
    %170 = arith.negf %169 : vector<2x32xf32>
    %171 = math.exp %170 : vector<2x32xf32>
    %cst_47 = arith.constant 1.000000e+00 : f32
    %172 = vector.broadcast %cst_47 : f32 to vector<2x32xf32>
    %173 = arith.addf %172, %171 : vector<2x32xf32>
    %174 = arith.divf %172, %173 : vector<2x32xf32>
    %175 = vector.extract_strided_slice %168 {offsets = [0, 32], sizes = [2, 32], strides = [1, 1]} : vector<2x128xf32> to vector<2x32xf32>
    %176 = arith.negf %175 : vector<2x32xf32>
    %177 = math.exp %176 : vector<2x32xf32>
    %cst_48 = arith.constant 1.000000e+00 : f32
    %178 = vector.broadcast %cst_48 : f32 to vector<2x32xf32>
    %179 = arith.addf %178, %177 : vector<2x32xf32>
    %180 = arith.divf %178, %179 : vector<2x32xf32>
    %181 = vector.extract_strided_slice %168 {offsets = [0, 64], sizes = [2, 32], strides = [1, 1]} : vector<2x128xf32> to vector<2x32xf32>
    %182 = math.tanh %181 : vector<2x32xf32>
    %183 = vector.extract_strided_slice %168 {offsets = [0, 96], sizes = [2, 32], strides = [1, 1]} : vector<2x128xf32> to vector<2x32xf32>
    %184 = arith.negf %183 : vector<2x32xf32>
    %185 = math.exp %184 : vector<2x32xf32>
    %cst_49 = arith.constant 1.000000e+00 : f32
    %186 = vector.broadcast %cst_49 : f32 to vector<2x32xf32>
    %187 = arith.addf %186, %185 : vector<2x32xf32>
    %188 = arith.divf %186, %187 : vector<2x32xf32>
    %189 = arith.mulf %180, %152 : vector<2x32xf32>
    %190 = arith.mulf %174, %182 : vector<2x32xf32>
    %191 = arith.addf %189, %190 : vector<2x32xf32>
    %192 = math.tanh %191 : vector<2x32xf32>
    %193 = arith.mulf %188, %192 : vector<2x32xf32>
    %cst_50 = arith.constant dense<0.000000e+00> : vector<2x16xf32>
    %194 = tpu.matmul %193, %2, %cst_50 {dimension_numbers = #tpu.dot_dimension_numbers<[1], [0], [0], [1], [0, 0, 1, 1], [], []>} : vector<2x32xf32>, vector<32x16xf32>, vector<2x16xf32> -> vector<2x16xf32>
    %195 = vector.broadcast %3 : vector<1x16xf32> to vector<2x16xf32>
    %196 = arith.addf %194, %195 : vector<2x16xf32>
    %197 = arith.index_cast %c4_i32 : i32 to index
    %c0_51 = arith.constant 0 : index
    %c0_52 = arith.constant 0 : index
    %198 = vector.load %arg5[%197, %c0_51, %c0_52] : memref<8x2x16xf32, #tpu.memory_space<vmem>>, vector<1x2x16xf32>
    %199 = vector.shape_cast %198 : vector<1x2x16xf32> to vector<2x16xf32>
    %200 = vector.shape_cast %196 : vector<2x16xf32> to vector<1x2x16xf32>
    tpu.vector_store %arg5[%197, %c0_51, %c0_52], %200 {strides = array<i32>} : memref<8x2x16xf32, #tpu.memory_space<vmem>>, vector<1x2x16xf32>,
    %c5_i32 = arith.constant 5 : i32
    %201 = arith.index_cast %c5_i32 : i32 to index
    %c0_53 = arith.constant 0 : index
    %c0_54 = arith.constant 0 : index
    %202 = vector.load %arg0[%201, %c0_53, %c0_54] : memref<8x2x32xf32, #tpu.memory_space<vmem>>, vector<1x2x32xf32>
    %203 = vector.shape_cast %202 : vector<1x2x32xf32> to vector<2x32xf32>
    %204 = tpu.concatenate %203, %193 in 1 : vector<2x32xf32>, vector<2x32xf32> -> vector<2x64xf32>
    %cst_55 = arith.constant dense<0.000000e+00> : vector<2x128xf32>
    %205 = tpu.matmul %204, %0, %cst_55 {dimension_numbers = #tpu.dot_dimension_numbers<[1], [0], [0], [1], [0, 0, 1, 1], [], []>} : vector<2x64xf32>, vector<64x128xf32>, vector<2x128xf32> -> vector<2x128xf32>
    %206 = vector.broadcast %1 : vector<1x128xf32> to vector<2x128xf32>
    %207 = arith.addf %205, %206 : vector<2x128xf32>
    %208 = vector.extract_strided_slice %207 {offsets = [0, 0], sizes = [2, 32], strides = [1, 1]} : vector<2x128xf32> to vector<2x32xf32>
    %209 = arith.negf %208 : vector<2x32xf32>
    %210 = math.exp %209 : vector<2x32xf32>
    %cst_56 = arith.constant 1.000000e+00 : f32
    %211 = vector.broadcast %cst_56 : f32 to vector<2x32xf32>
    %212 = arith.addf %211, %210 : vector<2x32xf32>
    %213 = arith.divf %211, %212 : vector<2x32xf32>
    %214 = vector.extract_strided_slice %207 {offsets = [0, 32], sizes = [2, 32], strides = [1, 1]} : vector<2x128xf32> to vector<2x32xf32>
    %215 = arith.negf %214 : vector<2x32xf32>
    %216 = math.exp %215 : vector<2x32xf32>
    %cst_57 = arith.constant 1.000000e+00 : f32
    %217 = vector.broadcast %cst_57 : f32 to vector<2x32xf32>
    %218 = arith.addf %217, %216 : vector<2x32xf32>
    %219 = arith.divf %217, %218 : vector<2x32xf32>
    %220 = vector.extract_strided_slice %207 {offsets = [0, 64], sizes = [2, 32], strides = [1, 1]} : vector<2x128xf32> to vector<2x32xf32>
    %221 = math.tanh %220 : vector<2x32xf32>
    %222 = vector.extract_strided_slice %207 {offsets = [0, 96], sizes = [2, 32], strides = [1, 1]} : vector<2x128xf32> to vector<2x32xf32>
    %223 = arith.negf %222 : vector<2x32xf32>
    %224 = math.exp %223 : vector<2x32xf32>
    %cst_58 = arith.constant 1.000000e+00 : f32
    %225 = vector.broadcast %cst_58 : f32 to vector<2x32xf32>
    %226 = arith.addf %225, %224 : vector<2x32xf32>
    %227 = arith.divf %225, %226 : vector<2x32xf32>
    %228 = arith.mulf %219, %191 : vector<2x32xf32>
    %229 = arith.mulf %213, %221 : vector<2x32xf32>
    %230 = arith.addf %228, %229 : vector<2x32xf32>
    %231 = math.tanh %230 : vector<2x32xf32>
    %232 = arith.mulf %227, %231 : vector<2x32xf32>
    %cst_59 = arith.constant dense<0.000000e+00> : vector<2x16xf32>
    %233 = tpu.matmul %232, %2, %cst_59 {dimension_numbers = #tpu.dot_dimension_numbers<[1], [0], [0], [1], [0, 0, 1, 1], [], []>} : vector<2x32xf32>, vector<32x16xf32>, vector<2x16xf32> -> vector<2x16xf32>
    %234 = vector.broadcast %3 : vector<1x16xf32> to vector<2x16xf32>
    %235 = arith.addf %233, %234 : vector<2x16xf32>
    %236 = arith.index_cast %c5_i32 : i32 to index
    %c0_60 = arith.constant 0 : index
    %c0_61 = arith.constant 0 : index
    %237 = vector.load %arg5[%236, %c0_60, %c0_61] : memref<8x2x16xf32, #tpu.memory_space<vmem>>, vector<1x2x16xf32>
    %238 = vector.shape_cast %237 : vector<1x2x16xf32> to vector<2x16xf32>
    %239 = vector.shape_cast %235 : vector<2x16xf32> to vector<1x2x16xf32>
    tpu.vector_store %arg5[%236, %c0_60, %c0_61], %239 {strides = array<i32>} : memref<8x2x16xf32, #tpu.memory_space<vmem>>, vector<1x2x16xf32>,
    %c6_i32 = arith.constant 6 : i32
    %240 = arith.index_cast %c6_i32 : i32 to index
    %c0_62 = arith.constant 0 : index
    %c0_63 = arith.constant 0 : index
    %241 = vector.load %arg0[%240, %c0_62, %c0_63] : memref<8x2x32xf32, #tpu.memory_space<vmem>>, vector<1x2x32xf32>
    %242 = vector.shape_cast %241 : vector<1x2x32xf32> to vector<2x32xf32>
    %243 = tpu.concatenate %242, %232 in 1 : vector<2x32xf32>, vector<2x32xf32> -> vector<2x64xf32>
    %cst_64 = arith.constant dense<0.000000e+00> : vector<2x128xf32>
    %244 = tpu.matmul %243, %0, %cst_64 {dimension_numbers = #tpu.dot_dimension_numbers<[1], [0], [0], [1], [0, 0, 1, 1], [], []>} : vector<2x64xf32>, vector<64x128xf32>, vector<2x128xf32> -> vector<2x128xf32>
    %245 = vector.broadcast %1 : vector<1x128xf32> to vector<2x128xf32>
    %246 = arith.addf %244, %245 : vector<2x128xf32>
    %247 = vector.extract_strided_slice %246 {offsets = [0, 0], sizes = [2, 32], strides = [1, 1]} : vector<2x128xf32> to vector<2x32xf32>
    %248 = arith.negf %247 : vector<2x32xf32>
    %249 = math.exp %248 : vector<2x32xf32>
    %cst_65 = arith.constant 1.000000e+00 : f32
    %250 = vector.broadcast %cst_65 : f32 to vector<2x32xf32>
    %251 = arith.addf %250, %249 : vector<2x32xf32>
    %252 = arith.divf %250, %251 : vector<2x32xf32>
    %253 = vector.extract_strided_slice %246 {offsets = [0, 32], sizes = [2, 32], strides = [1, 1]} : vector<2x128xf32> to vector<2x32xf32>
    %254 = arith.negf %253 : vector<2x32xf32>
    %255 = math.exp %254 : vector<2x32xf32>
    %cst_66 = arith.constant 1.000000e+00 : f32
    %256 = vector.broadcast %cst_66 : f32 to vector<2x32xf32>
    %257 = arith.addf %256, %255 : vector<2x32xf32>
    %258 = arith.divf %256, %257 : vector<2x32xf32>
    %259 = vector.extract_strided_slice %246 {offsets = [0, 64], sizes = [2, 32], strides = [1, 1]} : vector<2x128xf32> to vector<2x32xf32>
    %260 = math.tanh %259 : vector<2x32xf32>
    %261 = vector.extract_strided_slice %246 {offsets = [0, 96], sizes = [2, 32], strides = [1, 1]} : vector<2x128xf32> to vector<2x32xf32>
    %262 = arith.negf %261 : vector<2x32xf32>
    %263 = math.exp %262 : vector<2x32xf32>
    %cst_67 = arith.constant 1.000000e+00 : f32
    %264 = vector.broadcast %cst_67 : f32 to vector<2x32xf32>
    %265 = arith.addf %264, %263 : vector<2x32xf32>
    %266 = arith.divf %264, %265 : vector<2x32xf32>
    %267 = arith.mulf %258, %230 : vector<2x32xf32>
    %268 = arith.mulf %252, %260 : vector<2x32xf32>
    %269 = arith.addf %267, %268 : vector<2x32xf32>
    %270 = math.tanh %269 : vector<2x32xf32>
    %271 = arith.mulf %266, %270 : vector<2x32xf32>
    %cst_68 = arith.constant dense<0.000000e+00> : vector<2x16xf32>
    %272 = tpu.matmul %271, %2, %cst_68 {dimension_numbers = #tpu.dot_dimension_numbers<[1], [0], [0], [1], [0, 0, 1, 1], [], []>} : vector<2x32xf32>, vector<32x16xf32>, vector<2x16xf32> -> vector<2x16xf32>
    %273 = vector.broadcast %3 : vector<1x16xf32> to vector<2x16xf32>
    %274 = arith.addf %272, %273 : vector<2x16xf32>
    %275 = arith.index_cast %c6_i32 : i32 to index
    %c0_69 = arith.constant 0 : index
    %c0_70 = arith.constant 0 : index
    %276 = vector.load %arg5[%275, %c0_69, %c0_70] : memref<8x2x16xf32, #tpu.memory_space<vmem>>, vector<1x2x16xf32>
    %277 = vector.shape_cast %276 : vector<1x2x16xf32> to vector<2x16xf32>
    %278 = vector.shape_cast %274 : vector<2x16xf32> to vector<1x2x16xf32>
    tpu.vector_store %arg5[%275, %c0_69, %c0_70], %278 {strides = array<i32>} : memref<8x2x16xf32, #tpu.memory_space<vmem>>, vector<1x2x16xf32>,
    %c7_i32 = arith.constant 7 : i32
    %279 = arith.index_cast %c7_i32 : i32 to index
    %c0_71 = arith.constant 0 : index
    %c0_72 = arith.constant 0 : index
    %280 = vector.load %arg0[%279, %c0_71, %c0_72] : memref<8x2x32xf32, #tpu.memory_space<vmem>>, vector<1x2x32xf32>
    %281 = vector.shape_cast %280 : vector<1x2x32xf32> to vector<2x32xf32>
    %282 = tpu.concatenate %281, %271 in 1 : vector<2x32xf32>, vector<2x32xf32> -> vector<2x64xf32>
    %cst_73 = arith.constant dense<0.000000e+00> : vector<2x128xf32>
    %283 = tpu.matmul %282, %0, %cst_73 {dimension_numbers = #tpu.dot_dimension_numbers<[1], [0], [0], [1], [0, 0, 1, 1], [], []>} : vector<2x64xf32>, vector<64x128xf32>, vector<2x128xf32> -> vector<2x128xf32>
    %284 = vector.broadcast %1 : vector<1x128xf32> to vector<2x128xf32>
    %285 = arith.addf %283, %284 : vector<2x128xf32>
    %286 = vector.extract_strided_slice %285 {offsets = [0, 0], sizes = [2, 32], strides = [1, 1]} : vector<2x128xf32> to vector<2x32xf32>
    %287 = arith.negf %286 : vector<2x32xf32>
    %288 = math.exp %287 : vector<2x32xf32>
    %cst_74 = arith.constant 1.000000e+00 : f32
    %289 = vector.broadcast %cst_74 : f32 to vector<2x32xf32>
    %290 = arith.addf %289, %288 : vector<2x32xf32>
    %291 = arith.divf %289, %290 : vector<2x32xf32>
    %292 = vector.extract_strided_slice %285 {offsets = [0, 32], sizes = [2, 32], strides = [1, 1]} : vector<2x128xf32> to vector<2x32xf32>
    %293 = arith.negf %292 : vector<2x32xf32>
    %294 = math.exp %293 : vector<2x32xf32>
    %cst_75 = arith.constant 1.000000e+00 : f32
    %295 = vector.broadcast %cst_75 : f32 to vector<2x32xf32>
    %296 = arith.addf %295, %294 : vector<2x32xf32>
    %297 = arith.divf %295, %296 : vector<2x32xf32>
    %298 = vector.extract_strided_slice %285 {offsets = [0, 64], sizes = [2, 32], strides = [1, 1]} : vector<2x128xf32> to vector<2x32xf32>
    %299 = math.tanh %298 : vector<2x32xf32>
    %300 = vector.extract_strided_slice %285 {offsets = [0, 96], sizes = [2, 32], strides = [1, 1]} : vector<2x128xf32> to vector<2x32xf32>
    %301 = arith.negf %300 : vector<2x32xf32>
    %302 = math.exp %301 : vector<2x32xf32>
    %cst_76 = arith.constant 1.000000e+00 : f32
    %303 = vector.broadcast %cst_76 : f32 to vector<2x32xf32>
    %304 = arith.addf %303, %302 : vector<2x32xf32>
    %305 = arith.divf %303, %304 : vector<2x32xf32>
    %306 = arith.mulf %297, %269 : vector<2x32xf32>
    %307 = arith.mulf %291, %299 : vector<2x32xf32>
    %308 = arith.addf %306, %307 : vector<2x32xf32>
    %309 = math.tanh %308 : vector<2x32xf32>
    %310 = arith.mulf %305, %309 : vector<2x32xf32>
    %cst_77 = arith.constant dense<0.000000e+00> : vector<2x16xf32>
    %311 = tpu.matmul %310, %2, %cst_77 {dimension_numbers = #tpu.dot_dimension_numbers<[1], [0], [0], [1], [0, 0, 1, 1], [], []>} : vector<2x32xf32>, vector<32x16xf32>, vector<2x16xf32> -> vector<2x16xf32>
    %312 = vector.broadcast %3 : vector<1x16xf32> to vector<2x16xf32>
    %313 = arith.addf %311, %312 : vector<2x16xf32>
    %314 = arith.index_cast %c7_i32 : i32 to index
    %c0_78 = arith.constant 0 : index
    %c0_79 = arith.constant 0 : index
    %315 = vector.load %arg5[%314, %c0_78, %c0_79] : memref<8x2x16xf32, #tpu.memory_space<vmem>>, vector<1x2x16xf32>
    %316 = vector.shape_cast %315 : vector<1x2x16xf32> to vector<2x16xf32>
    %317 = vector.shape_cast %313 : vector<2x16xf32> to vector<1x2x16xf32>
    tpu.vector_store %arg5[%314, %c0_78, %c0_79], %317 {strides = array<i32>} : memref<8x2x16xf32, #tpu.memory_space<vmem>>, vector<1x2x16xf32>,
    %c8_i32 = arith.constant 8 : i32
    return
  }
}

</mosaic_0001>

<bundles_post_ra>
// kernel: text_to_text_forward.1
= control target key start
LH: loop header
LB: loop body
LE: loop exit
PB: predicated region body
PF: predicated region fallthrough
CT: control target
= control target key end

     0   :  { %v2125_v3 = vmov 0.0|0.0   ;;  %vm2126_vm0 = vmmov 0   ;;  %v2127_v6 = vmov 0.0   ;;  %s2477_s0 = inlined_call_operand.vmem [shape: f32[8,2,32], index: 0, kind: input, shape index: {}]   ;;  %s2478_s1 = inlined_call_operand.vmem [shape: f32[64,128], index: 1, kind: input, shape index: {}]   ;;  %s2479_s2 = inlined_call_operand.vmem [shape: f32[1,128], index: 2, kind: input, shape index: {}]   ;;  %s2480_s3 = inlined_call_operand.vmem [shape: f32[32,16], index: 3, kind: input, shape index: {}]   ;;  %s2481_s4 = inlined_call_operand.vmem [shape: f32[1,16], index: 4, kind: input, shape index: {}]   ;;  %s2482_s5 = inlined_call_operand.hbm [shape: f32[8,2,16], index: 5, kind: output, shape index: {}]  }
   0x1   :  { %v21_v0 = vld [vmem:[%s2478_s1] sm:$0xff]  ;;  %v22_v1 = vld [vmem:[%s2478_s1 + $0x8] sm:$0xff]  ;;  %v23_v2 = vld [vmem:[%s2478_s1 + $0x10] sm:$0xff]  ;;  %1886 = vmatprep.subr.bf16.mxu0 %v2125_v3  ;;  %1662 = vmatprep.mubr.msk.f32.mxu0 %vm2126_vm0, %v2127_v6 }
   0x2   :  { %v2172_v4 = vpack.c.bf16 %v22_v1, %v21_v0  ;;  %v24_v5 = vld [vmem:[%s2478_s1 + $0x18] sm:$0xff]  ;;  %1898 = vmatprep.subr.bf16.mxu1 %v2125_v3  ;;  %1673 = vmatprep.mubr.msk.f32.mxu1 %vm2126_vm0, %v2127_v6 }
   0x3   :  { %v2183_v7 = vpack.c.bf16 %v24_v5, %v23_v2 }
   0x4   :  { %1888 = vmatpush3.bf16.msra.mxu0 %v2172_v4 }
   0x5   :  { %10 = vsyncpa [#allocation3], 0  ;;  %1889 = vmatprep.subr.bf16.mxu0 %v2125_v3  ;;  %v25_v8 = vld [vmem:[%s2478_s1 + $0x20] sm:$0xff]  ;;  %v26_v9 = vld [vmem:[%s2478_s1 + $0x28] sm:$0xff]  ;;  %vm36_vm1 = vcmask 261120   ;;  %vm44_vm2 = vcmask 523264  }
   0x6   :  { %v2193_v10 = vpack.c.bf16 %v26_v9, %v25_v8  ;;  %v27_v11 = vld [vmem:[%s2478_s1 + $0x30] sm:$0xff]  ;;  %v28_v12 = vld [vmem:[%s2478_s1 + $0x38] sm:$0xff]  ;;  %v35_v14 = vld [vmem:[%s2477_s0] sm:$0x3]  ;;  %s2128_s12 = smov 64   ;;  %s2129_s13 = smov 32  }
   0x7   :  { %v2203_v13 = vpack.c.bf16 %v28_v12, %v27_v11  ;;  %v37_v15 = vsel %vm36_vm1, %v35_v14, 0.0  ;;  %v2218_v16 = vld [vmem:[%s2479_s2] ss:$0 sm:$0xff]  ;;  %v31_v31 = vld [vmem:[%s2480_s3 + $0x8] sm:$0xff]  ;;  %v32_v32 = vld [vmem:[%s2480_s3 + $0x10] sm:$0xff]  ;;  %vm223_vm3 = vcmask 123904  }
   0x8   :  { %1891 = vmatpush3.bf16.msra.mxu0 %v2183_v7  ;;  %v30_v30 = vld [vmem:[%s2480_s3] sm:$0xff]  ;;  %v33_v34 = vld [vmem:[%s2480_s3 + $0x18] sm:$0xff] }
   0x9   :  { %1892 = vmatprep.subr.bf16.mxu0 %v2125_v3  ;;  %v2235_v33 = vpack.c.bf16 %v31_v31, %v30_v30  ;;  %v2241_v35 = vpack.c.bf16 %v33_v34, %v32_v32  ;;  %v1506_v40 = vld [vmem:[%s2477_s0 + $0x2] sm:$0x3]  ;;  %v2278_v43 = vld [vmem:[%s2481_s4] ss:$0 sm:$0xff]  ;;  %v1510_v0 = vld [vmem:[%s2477_s0 + $0x4] sm:$0x3] }
   0xa   :  { %v1514_v30 = vld [vmem:[%s2477_s0 + $0x6] sm:$0x3] }
   0xb   :  { %1900 = vmatpush3.bf16.msra.mxu1 %v2235_v33 }
   0xc   :  { %1894 = vmatpush3.bf16.msra.mxu0 %v2193_v10  ;;  %1901 = vmatprep.subr.bf16.mxu1 %v2125_v3 }
   0xd   :  { %1895 = vmatprep.subr.bf16.mxu0 %v2125_v3 }
   0xf   :  { %1903 = vmatpush3.bf16.msra.mxu1 %v2241_v35 }
  0x10   :  { %1897 = vmatpush3.bf16.msra.mxu0 %v2203_v13  ;;  %1904 = vmatprep.subr.bf16.mxu1 %v2125_v3 }
  0x11   :  { %1916 = vmatprep.subr.bf16.mxu0 %v2125_v3 }
  0x13   :  { %1663 = vmatmul.mubr.msk.f32.vlgmr.msra.gmra.mrb[0].mxu0 %vm44_vm2, %v37_v15 }
  0x14   :  { %1703 = vmatprep.mubr.msk.f32.mxu0 %vm2126_vm0, %v2127_v6  ;;  %1918 = vmatpush3.bf16.msra.mxu0 %v2235_v33 }
  0x15   :  { %1919 = vmatprep.subr.bf16.mxu0 %v2125_v3 }
  0x18   :  { %1921 = vmatpush3.bf16.msra.mxu0 %v2241_v35 }
  0x19   :  { %1922 = vmatprep.subr.bf16.mxu0 %v2125_v3 }
  0xe6   :  { %v114_v17 = vpop.f32.mrb[0].mxu0 }
  0xe7   :  { %v115_v18 = vadd.f32 %v2218_v16, %v114_v17  ;;  %v1664_v19 = vpop.f32.mrb[1].mxu0 }
  0xe9   :  { %2037 = vtanh.f32 %v115_v18  ;;  %v1503_v21 = vmul.f32 -1.442695, %v115_v18 }
  0xeb   :  { %2039 = vpow2.f32 %v1503_v21 }
  0xf3   :  { %v2038_v20 = vpop.eup %2037 }
  0xf4   :  { %127 = vrot.lane.b32.xlu0 %v2038_v20, %s2128_s12 }
  0xf5   :  { %v2040_v22 = vpop.eup %2039 }
  0xf6   :  { %v121_v23 = vadd.f32 1.0, %v2040_v22 }
  0xf8   :  { %2041 = vrcp.f32 %v121_v23 }
 0x102   :  { %v2042_v24 = vpop.eup %2041 }
 0x103   :  { %v125_v27 = vmul.f32 0.0, %v2042_v24 }
 0x166   :  { %v128_v25 = vpop.permute.xlu0 %127 }
 0x167   :  { %v130_v26 = vmul.f32 %v2042_v24, %v128_v25 }
 0x169   :  { %132 = vrot.lane.b32.xlu0 %v130_v26, %s2129_s13 }
 0x1db   :  { %v133_v28 = vpop.permute.xlu0 %132 }
 0x1dc   :  { %v2223_v29 = vadd.f32 %v133_v28, %v125_v27 }
 0x1de   :  { %2043 = vtanh.f32 %v2223_v29 }
 0x1e8   :  { %v2044_v36 = vpop.eup %2043 }
 0x1e9   :  { %138 = vrot.lane.b32.xlu1 %v2044_v36, %s2128_s12 }
 0x25b   :  { %v139_v37 = vpop.permute.xlu1 %138 }
 0x25c   :  { %v141_v38 = vmul.f32 %v2042_v24, %v139_v37 }
 0x25e   :  { %227 = vrot.lane.b32.xlu0 %v141_v38, %s2128_s12  ;;  %149 = vrot.lane.b32.xlu1 %v141_v38, %s2129_s13 }
 0x2d0   :  { %v150_v39 = vpop.permute.xlu1 %149  ;;  %v228_v41 = vpop.permute.xlu0 %227 }
 0x2d1   :  { %1674 = vmatmul.mubr.msk.f32.vlgmr.msra.gmra.mrb[0].mxu1 %vm36_vm1, %v150_v39  ;;  %v230_v42 = vsel %vm36_vm1, %v1506_v40, %v228_v41 }
 0x2d2   :  { %1906 = vmatpush3.bf16.msra.mxu1 %v2172_v4  ;;  %1692 = vmatprep.mubr.msk.f32.mxu1 %vm2126_vm0, %v2127_v6 }
 0x2d3   :  { %1907 = vmatprep.subr.bf16.mxu1 %v2125_v3 }
 0x2d6   :  { %1909 = vmatpush3.bf16.msra.mxu1 %v2183_v7 }
 0x2d7   :  { %1910 = vmatprep.subr.bf16.mxu1 %v2125_v3 }
 0x2da   :  { %1912 = vmatpush3.bf16.msra.mxu1 %v2193_v10 }
 0x2db   :  { %1913 = vmatprep.subr.bf16.mxu1 %v2125_v3 }
 0x2de   :  { %1915 = vmatpush3.bf16.msra.mxu1 %v2203_v13 }
 0x2df   :  { %1934 = vmatprep.subr.bf16.mxu1 %v2125_v3 }
 0x2e1   :  { %1693 = vmatmul.mubr.msk.f32.vlgmr.msra.gmra.mrb[2].mxu1 %vm44_vm2, %v230_v42 }
 0x2e2   :  { %1936 = vmatpush3.bf16.msra.mxu1 %v2235_v33  ;;  %1733 = vmatprep.mubr.msk.f32.mxu1 %vm2126_vm0, %v2127_v6 }
 0x2e3   :  { %1937 = vmatprep.subr.bf16.mxu1 %v2125_v3 }
 0x2e6   :  { %1939 = vmatpush3.bf16.msra.mxu1 %v2241_v35 }
 0x2e7   :  { %1940 = vmatprep.subr.bf16.mxu1 %v2125_v3 }
 0x3a4   :  { %v219_v44 = vpop.f32.mrb[0].mxu1 }
 0x3a5   :  { %v220_v45 = vadd.f32 %v2278_v43, %v219_v44  ;;  %v1675_v46 = vpop.f32.mrb[1].mxu1 }
 0x3a7   :  { %224 = vst.msk [vmem:[#allocation2] sm:$0x3] %vm223_vm3, %v220_v45 }
 0x3b4   :  { %v300_v47 = vpop.f32.mrb[2].mxu1 }
 0x3b5   :  { %v301_v48 = vadd.f32 %v2218_v16, %v300_v47  ;;  %v1694_v49 = vpop.f32.mrb[3].mxu1 }
 0x3b7   :  { %2045 = vtanh.f32 %v301_v48  ;;  %v1508_v51 = vmul.f32 -1.442695, %v301_v48 }
 0x3b9   :  { %2047 = vpow2.f32 %v1508_v51 }
 0x3c1   :  { %v2046_v50 = vpop.eup %2045 }
 0x3c2   :  { %313 = vrot.lane.b32.xlu1 %v2046_v50, %s2128_s12 }
 0x3c3   :  { %v2048_v52 = vpop.eup %2047 }
 0x3c4   :  { %v307_v53 = vadd.f32 1.0, %v2048_v52 }
 0x3c6   :  { %2049 = vrcp.f32 %v307_v53 }
 0x3d0   :  { %v2050_v54 = vpop.eup %2049 }
 0x3d1   :  { %v311_v57 = vmul.f32 %v2050_v54, %v2223_v29 }
 0x434   :  { %v314_v55 = vpop.permute.xlu1 %313 }
 0x435   :  { %v316_v56 = vmul.f32 %v2050_v54, %v314_v55 }
 0x437   :  { %318 = vrot.lane.b32.xlu0 %v316_v56, %s2129_s13  ;;  %v1518_v56 = vld [vmem:[%s2477_s0 + $0x8] sm:$0x3] }
 0x4a9   :  { %v319_v58 = vpop.permute.xlu0 %318 }
 0x4aa   :  { %v321_v59 = vadd.f32 %v319_v58, %v311_v57 }
 0x4ac   :  { %2051 = vtanh.f32 %v321_v59 }
 0x4b6   :  { %v2052_v60 = vpop.eup %2051 }
 0x4b7   :  { %324 = vrot.lane.b32.xlu1 %v2052_v60, %s2128_s12 }
 0x529   :  { %v325_v61 = vpop.permute.xlu1 %324 }
 0x52a   :  { %v327_v62 = vmul.f32 %v2050_v54, %v325_v61 }
 0x52c   :  { %407 = vrot.lane.b32.xlu1 %v327_v62, %s2128_s12  ;;  %329 = vrot.lane.b32.xlu0 %v327_v62, %s2129_s13 }
 0x59e   :  { %v330_v63 = vpop.permute.xlu0 %329  ;;  %v408_v1 = vpop.permute.xlu1 %407 }
 0x59f   :  { %1704 = vmatmul.mubr.msk.f32.vlgmr.msra.gmra.mrb[2].mxu0 %vm36_vm1, %v330_v63  ;;  %v410_v2 = vsel %vm36_vm1, %v1510_v0, %v408_v1 }
 0x5a0   :  { %1924 = vmatpush3.bf16.msra.mxu0 %v2172_v4  ;;  %1722 = vmatprep.mubr.msk.f32.mxu0 %vm2126_vm0, %v2127_v6 }
 0x5a1   :  { %1925 = vmatprep.subr.bf16.mxu0 %v2125_v3 }
 0x5a4   :  { %1927 = vmatpush3.bf16.msra.mxu0 %v2183_v7 }
 0x5a5   :  { %1928 = vmatprep.subr.bf16.mxu0 %v2125_v3 }
 0x5a8   :  { %1930 = vmatpush3.bf16.msra.mxu0 %v2193_v10 }
 0x5a9   :  { %1931 = vmatprep.subr.bf16.mxu0 %v2125_v3 }
 0x5ac   :  { %1933 = vmatpush3.bf16.msra.mxu0 %v2203_v13 }
 0x5ad   :  { %1952 = vmatprep.subr.bf16.mxu0 %v2125_v3 }
 0x5af   :  { %1723 = vmatmul.mubr.msk.f32.vlgmr.msra.gmra.mrb[4].mxu0 %vm44_vm2, %v410_v2 }
 0x5b0   :  { %1954 = vmatpush3.bf16.msra.mxu0 %v2235_v33  ;;  %1763 = vmatprep.mubr.msk.f32.mxu0 %vm2126_vm0, %v2127_v6 }
 0x5b1   :  { %1955 = vmatprep.subr.bf16.mxu0 %v2125_v3 }
 0x5b4   :  { %1957 = vmatpush3.bf16.msra.mxu0 %v2241_v35 }
 0x5b5   :  { %1958 = vmatprep.subr.bf16.mxu0 %v2125_v3 }
 0x672   :  { %v399_v5 = vpop.f32.mrb[2].mxu0 }
 0x673   :  { %v400_v8 = vadd.f32 %v2278_v43, %v399_v5  ;;  %v1705_v9 = vpop.f32.mrb[3].mxu0 }
 0x675   :  { %404 = vst.msk [vmem:[#allocation2 + $0x2] sm:$0x3] %vm223_vm3, %v400_v8 }
 0x682   :  { %v480_v11 = vpop.f32.mrb[4].mxu0 }
 0x683   :  { %v481_v12 = vadd.f32 %v2218_v16, %v480_v11  ;;  %v1724_v14 = vpop.f32.mrb[5].mxu0 }
 0x685   :  { %2053 = vtanh.f32 %v481_v12  ;;  %v1512_v17 = vmul.f32 -1.442695, %v481_v12 }
 0x687   :  { %2055 = vpow2.f32 %v1512_v17 }
 0x68f   :  { %v2054_v15 = vpop.eup %2053 }
 0x690   :  { %493 = vrot.lane.b32.xlu0 %v2054_v15, %s2128_s12 }
 0x691   :  { %v2056_v18 = vpop.eup %2055 }
 0x692   :  { %v487_v19 = vadd.f32 1.0, %v2056_v18 }
 0x694   :  { %2057 = vrcp.f32 %v487_v19 }
 0x69e   :  { %v2058_v20 = vpop.eup %2057 }
 0x69f   :  { %v491_v23 = vmul.f32 %v2058_v20, %v321_v59 }
 0x702   :  { %v494_v21 = vpop.permute.xlu0 %493 }
 0x703   :  { %v496_v22 = vmul.f32 %v2058_v20, %v494_v21 }
 0x705   :  { %498 = vrot.lane.b32.xlu1 %v496_v22, %s2129_s13  ;;  %v1522_v22 = vld [vmem:[%s2477_s0 + $0xa] sm:$0x3] }
 0x777   :  { %v499_v24 = vpop.permute.xlu1 %498 }
 0x778   :  { %v501_v25 = vadd.f32 %v499_v24, %v491_v23 }
 0x77a   :  { %2059 = vtanh.f32 %v501_v25 }
 0x784   :  { %v2060_v26 = vpop.eup %2059 }
 0x785   :  { %504 = vrot.lane.b32.xlu0 %v2060_v26, %s2128_s12 }
 0x7f7   :  { %v505_v27 = vpop.permute.xlu0 %504 }
 0x7f8   :  { %v507_v28 = vmul.f32 %v2058_v20, %v505_v27 }
 0x7fa   :  { %587 = vrot.lane.b32.xlu0 %v507_v28, %s2128_s12  ;;  %509 = vrot.lane.b32.xlu1 %v507_v28, %s2129_s13 }
 0x86c   :  { %v510_v29 = vpop.permute.xlu1 %509  ;;  %v588_v31 = vpop.permute.xlu0 %587 }
 0x86d   :  { %1734 = vmatmul.mubr.msk.f32.vlgmr.msra.gmra.mrb[4].mxu1 %vm36_vm1, %v510_v29  ;;  %v590_v32 = vsel %vm36_vm1, %v1514_v30, %v588_v31 }
 0x86e   :  { %1942 = vmatpush3.bf16.msra.mxu1 %v2172_v4  ;;  %1752 = vmatprep.mubr.msk.f32.mxu1 %vm2126_vm0, %v2127_v6 }
 0x86f   :  { %1943 = vmatprep.subr.bf16.mxu1 %v2125_v3 }
 0x872   :  { %1945 = vmatpush3.bf16.msra.mxu1 %v2183_v7 }
 0x873   :  { %1946 = vmatprep.subr.bf16.mxu1 %v2125_v3 }
 0x876   :  { %1948 = vmatpush3.bf16.msra.mxu1 %v2193_v10 }
 0x877   :  { %1949 = vmatprep.subr.bf16.mxu1 %v2125_v3 }
 0x87a   :  { %1951 = vmatpush3.bf16.msra.mxu1 %v2203_v13 }
 0x87b   :  { %1970 = vmatprep.subr.bf16.mxu1 %v2125_v3 }
 0x87d   :  { %1753 = vmatmul.mubr.msk.f32.vlgmr.msra.gmra.mrb[6].mxu1 %vm44_vm2, %v590_v32 }
 0x87e   :  { %1972 = vmatpush3.bf16.msra.mxu1 %v2235_v33  ;;  %1793 = vmatprep.mubr.msk.f32.mxu1 %vm2126_vm0, %v2127_v6 }
 0x87f   :  { %1973 = vmatprep.subr.bf16.mxu1 %v2125_v3 }
 0x882   :  { %1975 = vmatpush3.bf16.msra.mxu1 %v2241_v35 }
 0x883   :  { %1976 = vmatprep.subr.bf16.mxu1 %v2125_v3 }
 0x940   :  { %v579_v34 = vpop.f32.mrb[4].mxu1 }
 0x941   :  { %v580_v36 = vadd.f32 %v2278_v43, %v579_v34  ;;  %v1735_v37 = vpop.f32.mrb[5].mxu1 }
 0x943   :  { %584 = vst.msk [vmem:[#allocation2 + $0x4] sm:$0x3] %vm223_vm3, %v580_v36 }
 0x950   :  { %v660_v38 = vpop.f32.mrb[6].mxu1 }
 0x951   :  { %v661_v39 = vadd.f32 %v2218_v16, %v660_v38  ;;  %v1754_v40 = vpop.f32.mrb[7].mxu1 }
 0x953   :  { %2061 = vtanh.f32 %v661_v39  ;;  %v1516_v42 = vmul.f32 -1.442695, %v661_v39 }
 0x955   :  { %2063 = vpow2.f32 %v1516_v42 }
 0x95d   :  { %v2062_v41 = vpop.eup %2061 }
 0x95e   :  { %673 = vrot.lane.b32.xlu1 %v2062_v41, %s2128_s12 }
 0x95f   :  { %v2064_v44 = vpop.eup %2063 }
 0x960   :  { %v667_v45 = vadd.f32 1.0, %v2064_v44 }
 0x962   :  { %2065 = vrcp.f32 %v667_v45 }
 0x96c   :  { %v2066_v46 = vpop.eup %2065 }
 0x96d   :  { %v671_v49 = vmul.f32 %v2066_v46, %v501_v25 }
 0x9d0   :  { %v674_v47 = vpop.permute.xlu1 %673 }
 0x9d1   :  { %v676_v48 = vmul.f32 %v2066_v46, %v674_v47 }
 0x9d3   :  { %678 = vrot.lane.b32.xlu0 %v676_v48, %s2129_s13  ;;  %v1526_v48 = vld [vmem:[%s2477_s0 + $0xc] sm:$0x3] }
 0xa45   :  { %v679_v50 = vpop.permute.xlu0 %678 }
 0xa46   :  { %v681_v51 = vadd.f32 %v679_v50, %v671_v49 }
 0xa48   :  { %2067 = vtanh.f32 %v681_v51 }
 0xa52   :  { %v2068_v52 = vpop.eup %2067 }
 0xa53   :  { %684 = vrot.lane.b32.xlu1 %v2068_v52, %s2128_s12 }
 0xac5   :  { %v685_v53 = vpop.permute.xlu1 %684 }
 0xac6   :  { %v687_v54 = vmul.f32 %v2066_v46, %v685_v53 }
 0xac8   :  { %767 = vrot.lane.b32.xlu1 %v687_v54, %s2128_s12  ;;  %689 = vrot.lane.b32.xlu0 %v687_v54, %s2129_s13 }
 0xb3a   :  { %v690_v55 = vpop.permute.xlu0 %689  ;;  %v768_v57 = vpop.permute.xlu1 %767 }
 0xb3b   :  { %1764 = vmatmul.mubr.msk.f32.vlgmr.msra.gmra.mrb[6].mxu0 %vm36_vm1, %v690_v55  ;;  %v770_v58 = vsel %vm36_vm1, %v1518_v56, %v768_v57 }
 0xb3c   :  { %1960 = vmatpush3.bf16.msra.mxu0 %v2172_v4  ;;  %1782 = vmatprep.mubr.msk.f32.mxu0 %vm2126_vm0, %v2127_v6 }
 0xb3d   :  { %1961 = vmatprep.subr.bf16.mxu0 %v2125_v3 }
 0xb40   :  { %1963 = vmatpush3.bf16.msra.mxu0 %v2183_v7 }
 0xb41   :  { %1964 = vmatprep.subr.bf16.mxu0 %v2125_v3 }
 0xb44   :  { %1966 = vmatpush3.bf16.msra.mxu0 %v2193_v10 }
 0xb45   :  { %1967 = vmatprep.subr.bf16.mxu0 %v2125_v3 }
 0xb48   :  { %1969 = vmatpush3.bf16.msra.mxu0 %v2203_v13 }
 0xb49   :  { %1988 = vmatprep.subr.bf16.mxu0 %v2125_v3 }
 0xb4b   :  { %1783 = vmatmul.mubr.msk.f32.vlgmr.msra.gmra.mrb[8].mxu0 %vm44_vm2, %v770_v58 }
 0xb4c   :  { %1990 = vmatpush3.bf16.msra.mxu0 %v2235_v33  ;;  %1823 = vmatprep.mubr.msk.f32.mxu0 %vm2126_vm0, %v2127_v6 }
 0xb4d   :  { %1991 = vmatprep.subr.bf16.mxu0 %v2125_v3 }
 0xb50   :  { %1993 = vmatpush3.bf16.msra.mxu0 %v2241_v35 }
 0xb51   :  { %1994 = vmatprep.subr.bf16.mxu0 %v2125_v3 }
 0xc0e   :  { %v759_v59 = vpop.f32.mrb[6].mxu0 }
 0xc0f   :  { %v760_v60 = vadd.f32 %v2278_v43, %v759_v59  ;;  %v1765_v61 = vpop.f32.mrb[7].mxu0 }
 0xc11   :  { %764 = vst.msk [vmem:[#allocation2 + $0x6] sm:$0x3] %vm223_vm3, %v760_v60 }
 0xc1e   :  { %v840_v62 = vpop.f32.mrb[8].mxu0 }
 0xc1f   :  { %v841_v63 = vadd.f32 %v2218_v16, %v840_v62  ;;  %v1784_v0 = vpop.f32.mrb[9].mxu0 }
 0xc21   :  { %2069 = vtanh.f32 %v841_v63  ;;  %v1520_v2 = vmul.f32 -1.442695, %v841_v63 }
 0xc23   :  { %2071 = vpow2.f32 %v1520_v2 }
 0xc2b   :  { %v2070_v1 = vpop.eup %2069 }
 0xc2c   :  { %853 = vrot.lane.b32.xlu0 %v2070_v1, %s2128_s12 }
 0xc2d   :  { %v2072_v5 = vpop.eup %2071 }
 0xc2e   :  { %v847_v8 = vadd.f32 1.0, %v2072_v5 }
 0xc30   :  { %2073 = vrcp.f32 %v847_v8 }
 0xc3a   :  { %v2074_v9 = vpop.eup %2073 }
 0xc3b   :  { %v851_v14 = vmul.f32 %v2074_v9, %v681_v51 }
 0xc9e   :  { %v854_v11 = vpop.permute.xlu0 %853 }
 0xc9f   :  { %v856_v12 = vmul.f32 %v2074_v9, %v854_v11 }
 0xca1   :  { %858 = vrot.lane.b32.xlu1 %v856_v12, %s2129_s13 }
 0xd13   :  { %v859_v15 = vpop.permute.xlu1 %858 }
 0xd14   :  { %v861_v17 = vadd.f32 %v859_v15, %v851_v14 }
 0xd16   :  { %2075 = vtanh.f32 %v861_v17 }
 0xd20   :  { %v2076_v18 = vpop.eup %2075 }
 0xd21   :  { %864 = vrot.lane.b32.xlu0 %v2076_v18, %s2128_s12 }
 0xd93   :  { %v865_v19 = vpop.permute.xlu0 %864 }
 0xd94   :  { %v867_v20 = vmul.f32 %v2074_v9, %v865_v19  ;;  %v1530_v9 = vld [vmem:[%s2477_s0 + $0xe] sm:$0x3]  ;;  %s2130_s0 = smov [#allocation2]  }
 0xd95   :  { %s1490_s10 = sshll.u32 %s2130_s0, 4  ;;  %s1491_s10 = int_to_ptr.vmem [resolvable:$true] %s1490_s10 }
 0xd96   :  { %947 = vrot.lane.b32.xlu0 %v867_v20, %s2128_s12  ;;  %869 = vrot.lane.b32.xlu1 %v867_v20, %s2129_s13  ;;  %s2101_s1 = scalar_lea.vmem %s1491_s10, 256  ;;  %p2106_p1 = scmp.lt.s32.totalorder %s1491_s10, %s1491_s10 }
 0xd97   :  { %p2102_p0 = scmp.ne.s32.totalorder %s1491_s10, %s2101_s1  ;;  %p2107_p2 = scmp.lt.s32.totalorder %s2101_s1, %s2101_s1 }
 0xd99   :  { %p2108_p3 = por %p2107_p2, %p2106_p1 }
 0xd9b   :  { %p2109_p4 = pnand %p2108_p3, %p2102_p0 }
 0xe08   :  { %v870_v21 = vpop.permute.xlu1 %869  ;;  %v948_v23 = vpop.permute.xlu0 %947 }
 0xe09   :  { %1794 = vmatmul.mubr.msk.f32.vlgmr.msra.gmra.mrb[8].mxu1 %vm36_vm1, %v870_v21  ;;  %v950_v24 = vsel %vm36_vm1, %v1522_v22, %v948_v23 }
 0xe0a   :  { %1978 = vmatpush3.bf16.msra.mxu1 %v2172_v4  ;;  %1812 = vmatprep.mubr.msk.f32.mxu1 %vm2126_vm0, %v2127_v6 }
 0xe0b   :  { %1979 = vmatprep.subr.bf16.mxu1 %v2125_v3 }
 0xe0e   :  { %1981 = vmatpush3.bf16.msra.mxu1 %v2183_v7 }
 0xe0f   :  { %1982 = vmatprep.subr.bf16.mxu1 %v2125_v3 }
 0xe12   :  { %1984 = vmatpush3.bf16.msra.mxu1 %v2193_v10 }
 0xe13   :  { %1985 = vmatprep.subr.bf16.mxu1 %v2125_v3 }
 0xe16   :  { %1987 = vmatpush3.bf16.msra.mxu1 %v2203_v13 }
 0xe17   :  { %2006 = vmatprep.subr.bf16.mxu1 %v2125_v3 }
 0xe19   :  { %1813 = vmatmul.mubr.msk.f32.vlgmr.msra.gmra.mrb[10].mxu1 %vm44_vm2, %v950_v24 }
 0xe1a   :  { %2008 = vmatpush3.bf16.msra.mxu1 %v2235_v33  ;;  %1853 = vmatprep.mubr.msk.f32.mxu1 %vm2126_vm0, %v2127_v6 }
 0xe1b   :  { %2009 = vmatprep.subr.bf16.mxu1 %v2125_v3 }
 0xe1e   :  { %2011 = vmatpush3.bf16.msra.mxu1 %v2241_v35 }
 0xe1f   :  { %2012 = vmatprep.subr.bf16.mxu1 %v2125_v3 }
 0xedc   :  { %v939_v25 = vpop.f32.mrb[8].mxu1 }
 0xedd   :  { %v940_v26 = vadd.f32 %v2278_v43, %v939_v25  ;;  %v1795_v27 = vpop.f32.mrb[9].mxu1 }
 0xedf   :  { %944 = vst.msk [vmem:[#allocation2 + $0x8] sm:$0x3] %vm223_vm3, %v940_v26 }
 0xeec   :  { %v1020_v28 = vpop.f32.mrb[10].mxu1 }
 0xeed   :  { %v1021_v29 = vadd.f32 %v2218_v16, %v1020_v28  ;;  %v1814_v30 = vpop.f32.mrb[11].mxu1 }
 0xeef   :  { %2077 = vtanh.f32 %v1021_v29  ;;  %v1524_v32 = vmul.f32 -1.442695, %v1021_v29 }
 0xef1   :  { %2079 = vpow2.f32 %v1524_v32 }
 0xef9   :  { %v2078_v31 = vpop.eup %2077 }
 0xefa   :  { %1033 = vrot.lane.b32.xlu1 %v2078_v31, %s2128_s12 }
 0xefb   :  { %v2080_v34 = vpop.eup %2079 }
 0xefc   :  { %v1027_v36 = vadd.f32 1.0, %v2080_v34 }
 0xefe   :  { %2081 = vrcp.f32 %v1027_v36 }
 0xf08   :  { %v2082_v37 = vpop.eup %2081 }
 0xf09   :  { %v1031_v40 = vmul.f32 %v2082_v37, %v861_v17 }
 0xf6c   :  { %v1034_v38 = vpop.permute.xlu1 %1033 }
 0xf6d   :  { %v1036_v39 = vmul.f32 %v2082_v37, %v1034_v38 }
 0xf6f   :  { %1038 = vrot.lane.b32.xlu0 %v1036_v39, %s2129_s13 }
 0xfe1   :  { %v1039_v41 = vpop.permute.xlu0 %1038 }
 0xfe2   :  { %v1041_v42 = vadd.f32 %v1039_v41, %v1031_v40 }
 0xfe4   :  { %2083 = vtanh.f32 %v1041_v42 }
 0xfee   :  { %v2084_v44 = vpop.eup %2083 }
 0xfef   :  { %1044 = vrot.lane.b32.xlu1 %v2084_v44, %s2128_s12 }
0x1061   :  { %v1045_v45 = vpop.permute.xlu1 %1044 }
0x1062   :  { %v1047_v46 = vmul.f32 %v2082_v37, %v1045_v45 }
0x1064   :  { %1127 = vrot.lane.b32.xlu1 %v1047_v46, %s2128_s12  ;;  %1049 = vrot.lane.b32.xlu0 %v1047_v46, %s2129_s13 }
0x10d6   :  { %v1050_v47 = vpop.permute.xlu0 %1049  ;;  %v1128_v49 = vpop.permute.xlu1 %1127 }
0x10d7   :  { %1824 = vmatmul.mubr.msk.f32.vlgmr.msra.gmra.mrb[10].mxu0 %vm36_vm1, %v1050_v47  ;;  %v1130_v50 = vsel %vm36_vm1, %v1526_v48, %v1128_v49 }
0x10d8   :  { %1996 = vmatpush3.bf16.msra.mxu0 %v2172_v4  ;;  %1842 = vmatprep.mubr.msk.f32.mxu0 %vm2126_vm0, %v2127_v6 }
0x10d9   :  { %1997 = vmatprep.subr.bf16.mxu0 %v2125_v3 }
0x10dc   :  { %1999 = vmatpush3.bf16.msra.mxu0 %v2183_v7 }
0x10dd   :  { %2000 = vmatprep.subr.bf16.mxu0 %v2125_v3 }
0x10e0   :  { %2002 = vmatpush3.bf16.msra.mxu0 %v2193_v10 }
0x10e1   :  { %2003 = vmatprep.subr.bf16.mxu0 %v2125_v3 }
0x10e4   :  { %2005 = vmatpush3.bf16.msra.mxu0 %v2203_v13 }
0x10e5   :  { %2024 = vmatprep.subr.bf16.mxu0 %v2125_v3 }
0x10e7   :  { %1843 = vmatmul.mubr.msk.f32.vlgmr.msra.gmra.mrb[12].mxu0 %vm44_vm2, %v1130_v50 }
0x10e8   :  { %2026 = vmatpush3.bf16.msra.mxu0 %v2235_v33  ;;  %1883 = vmatprep.mubr.msk.f32.mxu0 %vm2126_vm0, %v2127_v6 }
0x10e9   :  { %2027 = vmatprep.subr.bf16.mxu0 %v2125_v3 }
0x10ec   :  { %2029 = vmatpush3.bf16.msra.mxu0 %v2241_v35 }
0x11aa   :  { %v1119_v51 = vpop.f32.mrb[10].mxu0 }
0x11ab   :  { %v1120_v52 = vadd.f32 %v2278_v43, %v1119_v51  ;;  %v1825_v53 = vpop.f32.mrb[11].mxu0 }
0x11ad   :  { %1124 = vst.msk [vmem:[#allocation2 + $0xa] sm:$0x3] %vm223_vm3, %v1120_v52 }
0x11ba   :  { %v1200_v54 = vpop.f32.mrb[12].mxu0 }
0x11bb   :  { %v1201_v55 = vadd.f32 %v2218_v16, %v1200_v54  ;;  %v1844_v56 = vpop.f32.mrb[13].mxu0 }
0x11bd   :  { %2085 = vtanh.f32 %v1201_v55  ;;  %v1528_v33 = vmul.f32 -1.442695, %v1201_v55 }
0x11bf   :  { %2087 = vpow2.f32 %v1528_v33 }
0x11c7   :  { %v2086_v57 = vpop.eup %2085 }
0x11c8   :  { %1213 = vrot.lane.b32.xlu0 %v2086_v57, %s2128_s12 }
0x11c9   :  { %v2088_v58 = vpop.eup %2087 }
0x11ca   :  { %v1207_v59 = vadd.f32 1.0, %v2088_v58 }
0x11cc   :  { %2089 = vrcp.f32 %v1207_v59 }
0x11d6   :  { %v2090_v35 = vpop.eup %2089 }
0x11d7   :  { %v1211_v62 = vmul.f32 %v2090_v35, %v1041_v42 }
0x123a   :  { %v1214_v60 = vpop.permute.xlu0 %1213 }
0x123b   :  { %v1216_v61 = vmul.f32 %v2090_v35, %v1214_v60 }
0x123d   :  { %1218 = vrot.lane.b32.xlu1 %v1216_v61, %s2129_s13 }
0x12af   :  { %v1219_v63 = vpop.permute.xlu1 %1218 }
0x12b0   :  { %v1221_v0 = vadd.f32 %v1219_v63, %v1211_v62 }
0x12b2   :  { %2091 = vtanh.f32 %v1221_v0 }
0x12bc   :  { %v2092_v1 = vpop.eup %2091 }
0x12bd   :  { %1224 = vrot.lane.b32.xlu0 %v2092_v1, %s2128_s12 }
0x132f   :  { %v1225_v2 = vpop.permute.xlu0 %1224 }
0x1330   :  { %v1227_v5 = vmul.f32 %v2090_v35, %v1225_v2 }
0x1332   :  { %1307 = vrot.lane.b32.xlu0 %v1227_v5, %s2128_s12  ;;  %1229 = vrot.lane.b32.xlu1 %v1227_v5, %s2129_s13 }
0x13a4   :  { %v1230_v8 = vpop.permute.xlu1 %1229  ;;  %v1308_v11 = vpop.permute.xlu0 %1307 }
0x13a5   :  { %1854 = vmatmul.mubr.msk.f32.vlgmr.msra.gmra.mrb[12].mxu1 %vm36_vm1, %v1230_v8 }
0x13a6   :  { %2014 = vmatpush3.bf16.msra.mxu1 %v2172_v4  ;;  %1872 = vmatprep.mubr.msk.f32.mxu1 %vm2126_vm0, %v2127_v6  ;;  %v1310_v4 = vsel %vm36_vm1, %v1530_v9, %v1308_v11 }
0x13a7   :  { %2015 = vmatprep.subr.bf16.mxu1 %v2125_v3 }
0x13aa   :  { %2017 = vmatpush3.bf16.msra.mxu1 %v2183_v7 }
0x13ab   :  { %2018 = vmatprep.subr.bf16.mxu1 %v2125_v3 }
0x13ae   :  { %2020 = vmatpush3.bf16.msra.mxu1 %v2193_v10 }
0x13af   :  { %2021 = vmatprep.subr.bf16.mxu1 %v2125_v3 }
0x13b2   :  { %2023 = vmatpush3.bf16.msra.mxu1 %v2203_v13 }
0x13b5   :  { %1873 = vmatmul.mubr.msk.f32.vlgmr.msra.gmra.mrb[14].mxu1 %vm44_vm2, %v1310_v4 }
0x1478   :  { %v1299_v6 = vpop.f32.mrb[12].mxu1 }
0x1479   :  { %v1300_v7 = vadd.f32 %v2278_v43, %v1299_v6  ;;  %v1855_v12 = vpop.f32.mrb[13].mxu1 }
0x147b   :  { %1304 = vst.msk [vmem:[#allocation2 + $0xc] sm:$0x3] %vm223_vm3, %v1300_v7 }
0x1488   :  { %v1380_v10 = vpop.f32.mrb[14].mxu1 }
0x1489   :  { %v1381_v3 = vadd.f32 %v2218_v16, %v1380_v10  ;;  %v1874_v14 = vpop.f32.mrb[15].mxu1 }
0x148b   :  { %2093 = vtanh.f32 %v1381_v3  ;;  %v1532_v17 = vmul.f32 -1.442695, %v1381_v3 }
0x148d   :  { %2095 = vpow2.f32 %v1532_v17 }
0x1495   :  { %v2094_v15 = vpop.eup %2093 }
0x1496   :  { %1393 = vrot.lane.b32.xlu1 %v2094_v15, %s2128_s12 }
0x1497   :  { %v2096_v13 = vpop.eup %2095 }
0x1498   :  { %v1387_v18 = vadd.f32 1.0, %v2096_v13 }
0x149a   :  { %2097 = vrcp.f32 %v1387_v18 }
0x14a4   :  { %v2098_v19 = vpop.eup %2097 }
0x14a5   :  { %v1391_v22 = vmul.f32 %v2098_v19, %v1221_v0 }
0x1508   :  { %v1394_v20 = vpop.permute.xlu1 %1393 }
0x1509   :  { %v1396_v21 = vmul.f32 %v2098_v19, %v1394_v20 }
0x150b   :  { %1398 = vrot.lane.b32.xlu0 %v1396_v21, %s2129_s13 }
0x157d   :  { %v1399_v23 = vpop.permute.xlu0 %1398 }
0x157e   :  { %v1401_v24 = vadd.f32 %v1399_v23, %v1391_v22 }
0x1580   :  { %2099 = vtanh.f32 %v1401_v24 }
0x158a   :  { %v2100_v16 = vpop.eup %2099 }
0x158b   :  { %1404 = vrot.lane.b32.xlu1 %v2100_v16, %s2128_s12 }
0x15fd   :  { %v1405_v25 = vpop.permute.xlu1 %1404 }
0x15fe   :  { %v1407_v26 = vmul.f32 %v2098_v19, %v1405_v25 }
0x1600   :  { %1409 = vrot.lane.b32.xlu0 %v1407_v26, %s2129_s13 }
0x1672   :  { %v1410_v27 = vpop.permute.xlu0 %1409 }
0x1673   :  { %1884 = vmatmul.mubr.msk.f32.vlgmr.msra.gmra.mrb[14].mxu0 %vm36_vm1, %v1410_v27 }
0x1746   :  { %v1479_v28 = vpop.f32.mrb[14].mxu0 }
0x1747   :  { %v1480_v29 = vadd.f32 %v2278_v43, %v1479_v28  ;;  %v1885_v30 = vpop.f32.mrb[15].mxu0 }
0x1749   :  { %1484 = vst.msk [vmem:[#allocation2 + $0xe] sm:$0x3] %vm223_vm3, %v1480_v29 }
0x174a   :  { %2112 = shalt.err (!%p2109_p4)
}
0x174b   :  { %s2113_s2 = scalar_lea.hbm %s2482_s5, 256 }
0x174c   :  { %p2114_p5 = scmp.ne.s32.totalorder %s2482_s5, %s2113_s2  ;;  %p2117_p6 = scmp.lt.u32.totalorder %s2113_s2, %s2482_s5 }
0x174e   :  { %p2119_p7 = pnand %p2117_p6, %p2114_p5 }
0x1750   :  { %2122 = shalt.err (!%p2119_p7)
}
0x1751   :  { %s2131_s18 = smov 2  }
0x1752   :  { %1496 = dma.vmem_to_hbm [thread:$0]  %s1491_s10, 256, %s2482_s5, [#allocation3], %s2129_s13, %s2129_s13, %s2131_s18  }
0x1753   :  { %2123 = dma.done.wait [#allocation3], 256  }
0x1754   :  { %2124 = vsyncadd [#allocation3], 4294967040 }
0x1755   :  { %1500 = vsyncpa [#allocation3], 1 }

</bundles_post_ra>
